<compile_context>
chip_gen: v6e
topology: v6e:2x2x1
jax: 0.10.0
libtpu: 0.0.40
codegen_flags: <defaults>
</compile_context>

<pallas_src>
import functools

import jax
import jax.numpy as jnp
from jax.experimental import pallas as pl
from jax.experimental.pallas import tpu as pltpu


def _round_up(x: int, m: int) -> int:
    return ((x + m - 1) // m) * m


def _bembedding_kernel(idx_ref, w_ref, out_ref, *, padding_idx, sign_bool):
    """One grid step = one block of TB tokens.

    idx_ref : VMEM (TB, 1)  int32   token indices for this block
    w_ref   : VMEM (E, Dp)  bf16    full binary table (0/1), resident
    out_ref : VMEM (TB, Dp) f32     output rows for this block
    """
    tb = idx_ref.shape[0]
    num_embeddings = w_ref.shape[0]

    idx = idx_ref[...]                                          # (TB, 1) int32
    # One-hot gather on the MXU: (TB, E) @ (E, Dp) -> (TB, Dp) f32.
    iota = jax.lax.broadcasted_iota(jnp.int32, (tb, num_embeddings), 1)
    onehot = idx == iota
    if padding_idx is not None:
        # apply_padding folded into the (TB, E) mask: pad rows -> all-zero row.
        onehot = jnp.logical_and(onehot, idx != padding_idx)
    rows = jnp.dot(onehot.astype(jnp.bfloat16), w_ref[...],
                   preferred_element_type=jnp.float32)

    if sign_bool:
        # transform_zeros: 0 -> -1, 1 -> 1 (pad rows become all -1, as in torch)
        rows = rows * 2.0 - 1.0

    out_ref[...] = rows


def bembedding_forward(indices, weight, *, padding_idx=None, sign_bool=False,
                       token_block=256):
    """Pallas BEmbedding forward.

    indices: int array, any shape.
    weight : (num_embeddings, embedding_dim) binary table (bool or 0/1 ints).
    returns: (*indices.shape, embedding_dim) float32.
    """
    in_shape = indices.shape
    flat_idx = indices.reshape(-1).astype(jnp.int32)
    n_tok = flat_idx.shape[0]
    num_embeddings, emb_dim = weight.shape

    # Token block: multiple of 8 (sublane-aligned), capped for tiny inputs.
    tb = min(token_block, _round_up(n_tok, 8))
    n_pad = _round_up(n_tok, tb)
    if n_pad != n_tok:
        # Pad with index 0 (always valid); padded rows are sliced off below.
        flat_idx = jnp.pad(flat_idx, (0, n_pad - n_tok))
    idx_2d = flat_idx.reshape(n_pad, 1)

    # bf16 table: 0/1 exact, halves HBM/VMEM traffic vs f32, MXU-compatible on
    # every generation. Pad embedding_dim to a multiple of 128 so output
    # stores are unmasked lane-dense `vst` (no-op when already aligned).
    d_pad = _round_up(emb_dim, 128)
    w_bf16 = weight.astype(jnp.bfloat16)
    if d_pad != emb_dim:
        w_bf16 = jnp.pad(w_bf16, ((0, 0), (0, d_pad - emb_dim)))

    kernel = functools.partial(
        _bembedding_kernel, padding_idx=padding_idx, sign_bool=sign_bool
    )

    grid_spec = pl.GridSpec(
        grid=(n_pad // tb,),
        in_specs=[
            # (TB, 1): TB along sublanes (mult of 8), last dim = full extent.
            pl.BlockSpec((tb, 1), lambda i: (i, 0)),
            # Full table, constant block index -> DMA'd once, stays resident.
            pl.BlockSpec((num_embeddings, d_pad), lambda i: (0, 0)),
        ],
        out_specs=pl.BlockSpec((tb, d_pad), lambda i: (i, 0)),
    )

    # Raise the scoped-VMEM limit only when the resident table + tiles would
    # overflow the smallest default (16 MiB on v5e).
    est_bytes = (2 * num_embeddings * d_pad * 2          # table (margin for 2 bufs)
                 + 2 * tb * 1 * 4                        # index blocks
                 + 2 * tb * d_pad * 4                    # output blocks
                 + tb * num_embeddings * 2)              # one-hot temp
    vmem_limit = min(est_bytes + (4 << 20), 96 << 20) if est_bytes > (16 << 20) else None

    out = pl.pallas_call(
        kernel,
        out_shape=jax.ShapeDtypeStruct((n_pad, d_pad), jnp.float32),
        grid_spec=grid_spec,
        compiler_params=pltpu.CompilerParams(
            # Independent token blocks: shard across TCs on v7x.
            dimension_semantics=("parallel",),
            vmem_limit_bytes=vmem_limit,
        ),
    )(idx_2d, w_bf16)

    return out[:n_tok, :emb_dim].reshape(*in_shape, emb_dim)


def _reference(indices, weight, *, padding_idx=None, sign_bool=False):
    """Plain-JAX reference mirroring the torch forward exactly."""
    rows = weight[indices].astype(jnp.float32)
    if padding_idx is not None:
        rows = jnp.where((indices == padding_idx)[..., None], 0.0, rows)
    if sign_bool:
        rows = jnp.where(rows == 0.0, -1.0, rows)
    return rows


if __name__ == "__main__":
    num_embeddings = 32
    embedding_dim = 128
    padding_idx = 3
    sign_bool = True

    key = jax.random.PRNGKey(0)
    k_w, k_i = jax.random.split(key)

    # torch: Parameter(torch.rand((E, D)) > 0.5) -> binary table
    weight = (jax.random.uniform(k_w, (num_embeddings, embedding_dim)) > 0.5)

    # indices of shape (batch=2, seq=8), force one padding hit
    indices = jax.random.randint(k_i, (2, 8), 0, num_embeddings, dtype=jnp.int32)
    indices = indices.at[0, 0].set(padding_idx)

    out = bembedding_forward(
        indices, weight, padding_idx=padding_idx, sign_bool=sign_bool
    )
    out = jax.block_until_ready(out)

    ref = _reference(indices, weight, padding_idx=padding_idx, sign_bool=sign_bool)
    assert out.shape == (*indices.shape, embedding_dim), out.shape
    assert out.dtype == jnp.float32
    assert jnp.allclose(out, ref), "Pallas output mismatch vs reference"

    # Also exercise the no-padding / no-sign path.
    out2 = bembedding_forward(indices, weight)
    out2 = jax.block_until_ready(out2)
    ref2 = _reference(indices, weight)
    assert jnp.allclose(out2, ref2), "Pallas output mismatch (plain path)"

    # Non-multiple-of-128 embedding_dim path (lane padding inside the wrapper).
    weight3 = (jax.random.uniform(k_w, (num_embeddings, 96)) > 0.5)
    out3 = bembedding_forward(indices, weight3, padding_idx=padding_idx,
                              sign_bool=sign_bool)
    out3 = jax.block_until_ready(out3)
    ref3 = _reference(indices, weight3, padding_idx=padding_idx, sign_bool=sign_bool)
    assert jnp.allclose(out3, ref3), "Pallas output mismatch (padded-D path)"

    print("KERNEL_OK")
</pallas_src>

<mosaic_0001>
module attributes {stable_mosaic.version = 11 : i64} {
  func.func @_bembedding_kernel(%arg0: i32, %arg1: memref<16x1xi32, #tpu.memory_space<vmem>>, %arg2: memref<32x128xbf16, #tpu.memory_space<vmem>>, %arg3: memref<16x128xf32, #tpu.memory_space<vmem>>) attributes {dimension_semantics = [#tpu.dimension_semantics<parallel>], iteration_bounds = array<i64: 1>, scalar_prefetch = 0 : i64, scratch_operands = 0 : i64, tpu.core_type = #tpu.core_type<tc>, window_params = [{transform_indices = @transform_0, window_bounds = array<i64: 16, 1>}, {pipeline_mode = #tpu.pipeline_mode<synchronous>, transform_indices = @transform_1, window_bounds = array<i64: 32, 128>}, {transform_indices = @transform_2, window_bounds = array<i64: 16, 128>}]} {
    %c0 = arith.constant 0 : index
    %c0_0 = arith.constant 0 : index
    %0 = vector.load %arg1[%c0, %c0_0] : memref<16x1xi32, #tpu.memory_space<vmem>>, vector<16x1xi32>
    %1 = tpu.iota {dimensions = array<i32: 1>} : vector<16x32xi32>
    %2 = vector.broadcast %0 : vector<16x1xi32> to vector<16x32xi32>
    %3 = arith.cmpi eq, %2, %1 : vector<16x32xi32>
    %c3_i32 = arith.constant 3 : i32
    %4 = vector.broadcast %c3_i32 : i32 to vector<16x1xi32>
    %5 = arith.cmpi ne, %0, %4 : vector<16x1xi32>
    %6 = vector.broadcast %5 : vector<16x1xi1> to vector<16x32xi1>
    %7 = arith.andi %3, %6 : vector<16x32xi1>
    %8 = arith.extui %7 : vector<16x32xi1> to vector<16x32xi32>
    %9 = arith.sitofp %8 : vector<16x32xi32> to vector<16x32xf32>
    %10 = arith.truncf %9 : vector<16x32xf32> to vector<16x32xbf16>
    %c0_1 = arith.constant 0 : index
    %c0_2 = arith.constant 0 : index
    %11 = vector.load %arg2[%c0_1, %c0_2] : memref<32x128xbf16, #tpu.memory_space<vmem>>, vector<32x128xbf16>
    %cst = arith.constant dense<0.000000e+00> : vector<16x128xf32>
    %12 = tpu.matmul %10, %11, %cst {dimension_numbers = #tpu.dot_dimension_numbers<[1], [0], [0], [1], [0, 0, 1, 1], [], []>} : vector<16x32xbf16>, vector<32x128xbf16>, vector<16x128xf32> -> vector<16x128xf32>
    %cst_3 = arith.constant 2.000000e+00 : f32
    %13 = vector.broadcast %cst_3 : f32 to vector<16x128xf32>
    %14 = arith.mulf %12, %13 : vector<16x128xf32>
    %cst_4 = arith.constant 1.000000e+00 : f32
    %15 = vector.broadcast %cst_4 : f32 to vector<16x128xf32>
    %16 = arith.subf %14, %15 : vector<16x128xf32>
    %c0_5 = arith.constant 0 : index
    %c0_6 = arith.constant 0 : index
    %17 = vector.load %arg3[%c0_5, %c0_6] : memref<16x128xf32, #tpu.memory_space<vmem>>, vector<16x128xf32>
    tpu.vector_store %arg3[%c0_5, %c0_6], %16 {strides = array<i32>} : memref<16x128xf32, #tpu.memory_space<vmem>>, vector<16x128xf32>,
    return
  }
  func.func @transform_0(%arg0: i32) -> (i32, i32) {
    %c0_i32 = arith.constant 0 : i32
    %c0_i32_0 = arith.constant 0 : i32
    return %arg0, %c0_i32 : i32, i32
  }
  func.func @transform_1(%arg0: i32) -> (i32, i32) {
    %c0_i32 = arith.constant 0 : i32
    %c0_i32_0 = arith.constant 0 : i32
    %c0_i32_1 = arith.constant 0 : i32
    return %c0_i32, %c0_i32_0 : i32, i32
  }
  func.func @transform_2(%arg0: i32) -> (i32, i32) {
    %c0_i32 = arith.constant 0 : i32
    %c0_i32_0 = arith.constant 0 : i32
    return %arg0, %c0_i32 : i32, i32
  }
}

</mosaic_0001>

<bundles_post_ra>
// kernel: tpu_custom_call.1
= control target key start
LH: loop header
LB: loop body
LE: loop exit
PB: predicated region body
PF: predicated region fallthrough
CT: control target
= control target key end

     0   :  { %v177_v2 = vmov 0   ;;  %v178_v5 = vmov 0.0   ;;  %s213_s0 = inlined_call_operand.vmem [shape: s32[16,1], index: 0, kind: input, shape index: {}]   ;;  %s214_s1 = inlined_call_operand.vmem [shape: bf16[32,128], index: 1, kind: input, shape index: {}]   ;;  %s215_s2 = inlined_call_operand.hbm [shape: f32[16,128], index: 2, kind: output, shape index: {}]  }
   0x1   :  { %v13_v0 = vld [vmem:[%s213_s0] sm:$0xff]  ;;  %v14_v1 = vld [vmem:[%s213_s0 + $0x8] sm:$0xff]  ;;  %151 = vset.pattern.permute.xlu0 %v177_v2  ;;  %152 = vset.pattern.permute.xlu1 %v177_v2 }
   0x2   :  { %vm25_vm0 = vcmp.ne.s32.totalorder %v13_v0, 3  ;;  %vm26_vm1 = vcmp.ne.s32.totalorder %v14_v1, 3  ;;  %v153_v3 = vld [vmem:[%s214_s1 + $0x8] sm:$0xff]   ;;  %18 = vperm.xlu0 %151, %v13_v0   ;;  %137 = vmatprep.subr.bf16.mxu0 %v178_v5  ;;  %v154_v6 = vld [vmem:[%s214_s1] sm:$0xff]  }
   0x3   :  { %v27_v4 = vsel %vm25_vm0, 1, %v177_v2  ;;  %138 = vmatpush3.bf16.msra.mxu0 %v153_v3 }
   0x4   :  { %30 = vperm.xlu1 %152, %v27_v4  }
   0x5   :  { %7 = vsyncpa [#allocation3], 0  ;;  %v28_v7 = vsel %vm26_vm1, 1, %v177_v2  ;;  %139 = vmatprep.subr.bf16.mxu0 %v178_v5  ;;  %vm179_vm2 = vmmov 0   ;;  %v15_v8 = vlaneseq  ;;  %vm60_vm9 = vcmask 261120   ;;  %s180_s0 = smov [#allocation2]  }
   0x6   :  { %21 = vperm.xlu0 %151, %v14_v1   ;;  %141 = vmatprep.mubr.msk.bf16.mxu0 %vm179_vm2, %v178_v5  ;;  %s116_s1 = sshll.u32 %s180_s0, 4  ;;  %s117_s1 = int_to_ptr.vmem [resolvable:$true] %s116_s1 }
   0x7   :  { %140 = vmatpush3.bf16.msra.mxu0 %v154_v6  ;;  %v16_v9 = vand.u32 127, %v15_v8  ;;  %s155_s17 = scalar_lea.vmem %s117_s1, 256  ;;  %p160_p1 = scmp.lt.s32.totalorder %s117_s1, %s117_s1 }
   0x8   :  { %33 = vperm.xlu1 %152, %v28_v7   ;;  %p156_p0 = scmp.ne.s32.totalorder %s117_s1, %s155_s17  ;;  %p161_p2 = scmp.lt.s32.totalorder %s155_s17, %s155_s17 }
   0xa   :  { %p162_p3 = por %p161_p2, %p160_p1 }
   0xc   :  { %p163_p4 = pnand %p162_p3, %p156_p0 }
  0x7d   :  { %v19_v10 = vpop.permute.xlu0 %18 }
  0x7e   :  { %vm23_vm3 = vcmp.eq.s32.totalorder %v19_v10, %v16_v9 }
  0x7f   :  { %v31_v11 = vpop.permute.xlu1 %30 }
  0x80   :  { %vm35_vm4 = vcmp.eq.s32.totalorder %v31_v11, 1 }
  0x81   :  { %v22_v12 = vpop.permute.xlu0 %21  ;;  %vm37_vm5 = vmand %vm23_vm3, %vm35_vm4 }
  0x82   :  { %vm24_vm6 = vcmp.eq.s32.totalorder %v22_v12, %v16_v9  ;;  %v127_v14 = vsel %vm37_vm5, 1.0, %v178_v5 }
  0x83   :  { %v34_v13 = vpop.permute.xlu1 %33 }
  0x84   :  { %vm36_vm7 = vcmp.eq.s32.totalorder %v34_v13, 1 }
  0x85   :  { %vm38_vm8 = vmand %vm24_vm6, %vm36_vm7 }
  0x86   :  { %v128_v15 = vsel %vm38_vm8, 1.0, %v178_v5 }
  0x87   :  { %v43_v16 = vpack.c.bf16 %v128_v15, %v127_v14 }
  0x89   :  { %142 = vmatmul.mubr.msk.bf16.vlgmr.msra.gmra.mxu0 %vm60_vm9, %v43_v16 }
 0x149   :  { %v98_v17 = vpop.f32.mrf.mxu0 }
 0x14a   :  { %v105_v18 = vmul.f32 2.0, %v98_v17 }
 0x14b   :  { %v143_v19 = vpop.f32.mrf.mxu0 }
 0x14c   :  { %v132_v20 = vadd.f32 -1.0, %v105_v18 }
 0x14d   :  { %v101_v21 = vpop.f32.mrf.mxu0 }
 0x14e   :  { %109 = vst [vmem:[#allocation2] sm:$0xff] %v132_v20  ;;  %v106_v22 = vmul.f32 2.0, %v101_v21 }
 0x14f   :  { %v144_v23 = vpop.f32.mrf.mxu0 }
 0x150   :  { %v133_v24 = vadd.f32 -1.0, %v106_v22 }
 0x152   :  { %110 = vst [vmem:[#allocation2 + $0x8] sm:$0xff] %v133_v24 }
 0x153   :  { %166 = shalt.err (!%p163_p4)
}
 0x154   :  { %s181_s18 = smov 128   ;;  %s182_s19 = smov 8  }
 0x155   :  { %122 = dma.vmem_to_hbm [thread:$0]  %s117_s1, 256, %s215_s2, [#allocation3], %s181_s18, %s181_s18, %s182_s19  }
 0x156   :  { %175 = dma.done.wait [#allocation3], 256  }
 0x157   :  { %176 = vsyncadd [#allocation3], 4294967040 }
 0x158   :  { %126 = vsyncpa [#allocation3], 1 }

</bundles_post_ra>
